<compile_context>
chip_gen: v7x
topology: tpu7x:2x2x1
jax: 0.10.0
libtpu: 0.0.40
codegen_flags: <defaults>
</compile_context>

<pallas_src>
import jax
import jax.numpy as jnp
from jax.experimental import pallas as pl
from jax.experimental.pallas import tpu as pltpu

# (1 + 0.044715) * sqrt(2/pi) -- folded elementwise scale applied before tanh.
_TANH_SCALE = 1.044715 * 0.7978845608028654


def conv1x1_tanh_kernel(x_ref, w_ref, b_ref, o_ref):
    # x_ref: (1, M) pixels on lanes
    # w_ref: (Cout, 1), b_ref: (Cout, 1) per-sublane scalars
    # o_ref: (Cout, M) lane-dense output
    x = x_ref[...]                       # (1, M)
    w = w_ref[...]                       # (Cout, 1)
    b = b_ref[...]                       # (Cout, 1)
    v1 = x * w + b                       # broadcast -> (Cout, M)   (VPU)
    o_ref[...] = (jnp.tanh(v1 * _TANH_SCALE) + 1.0).astype(o_ref.dtype)  # EUP tanh


@jax.jit
def model_forward(x_nchw, weight, bias):
    """x_nchw: (N, 1, H, W); weight: (Cout, 1) (1x1 kernel squeezed); bias: (Cout,)."""
    N, Cin, H, W = x_nchw.shape
    Cout = weight.shape[0]
    assert Cin == 1, "kernel specialized for Cin == 1 (as in the module)"
    M = N * H * W

    # NCHW with Cin=1 is already a contiguous (N*H*W,) slab -> (1, M) view.
    x2d = x_nchw.reshape(1, M).astype(jnp.float32)
    w2d = weight.reshape(Cout, 1).astype(jnp.float32)
    b2d = bias.reshape(Cout, 1).astype(jnp.float32)

    out2d = pl.pallas_call(
        conv1x1_tanh_kernel,
        out_shape=jax.ShapeDtypeStruct((Cout, M), jnp.float32),
        in_specs=[
            pl.BlockSpec(memory_space=pltpu.MemorySpace.VMEM),
            pl.BlockSpec(memory_space=pltpu.MemorySpace.VMEM),
            pl.BlockSpec(memory_space=pltpu.MemorySpace.VMEM),
        ],
        out_specs=pl.BlockSpec(memory_space=pltpu.MemorySpace.VMEM),
    )(x2d, w2d, b2d)

    # (Cout, N*H*W) -> (N, Cout, H, W). For N == 1 this is a free reshape.
    out = out2d.reshape(Cout, N, H, W)
    if N == 1:
        return out.reshape(N, Cout, H, W)
    return jnp.transpose(out, (1, 0, 2, 3))


if __name__ == "__main__":
    key = jax.random.PRNGKey(0)
    kx, kw, kb = jax.random.split(key, 3)

    # Shapes from the module: x2 = randn(1, 1, 15, 15); Conv2d(1, 30, 1)
    N, Cin, H, W, Cout = 1, 1, 15, 15, 30
    x2 = jax.random.normal(kx, (N, Cin, H, W), dtype=jnp.float32)

    # Deterministic parameter init (uniform within PyTorch fan-in bound = 1/sqrt(1)).
    weight = jax.random.uniform(kw, (Cout, Cin), dtype=jnp.float32, minval=-1.0, maxval=1.0)
    bias = jax.random.uniform(kb, (Cout,), dtype=jnp.float32, minval=-1.0, maxval=1.0)

    out = model_forward(x2, weight, bias)
    out = jax.block_until_ready(out)
    assert out.shape == (N, Cout, H, W), out.shape

    # Pure-JAX reference: the original (unfused) op chain from the PyTorch module.
    v1 = jnp.einsum("nchw,oc->nohw", x2, weight) + bias[None, :, None, None]
    v4 = v1 * 0.044715
    v5 = v1 + v4
    v8 = v5 * 0.7978845608028654
    ref = jnp.tanh(v8) + 1.0
    assert jnp.allclose(out, ref, atol=1e-5, rtol=1e-5), float(jnp.max(jnp.abs(out - ref)))

    print("KERNEL_OK")
</pallas_src>

<mosaic_0001>
module attributes {stable_mosaic.version = 11 : i64} {
  func.func @conv1x1_tanh_kernel(%arg0: memref<1x225xf32, #tpu.memory_space<vmem>>, %arg1: memref<30x1xf32, #tpu.memory_space<vmem>>, %arg2: memref<30x1xf32, #tpu.memory_space<vmem>>, %arg3: memref<30x225xf32, #tpu.memory_space<vmem>>) attributes {dimension_semantics = [], scalar_prefetch = 0 : i64, scratch_operands = 0 : i64, tpu.core_type = #tpu.core_type<tc>} {
    %c0 = arith.constant 0 : index
    %c0_0 = arith.constant 0 : index
    %0 = vector.load %arg0[%c0, %c0_0] : memref<1x225xf32, #tpu.memory_space<vmem>>, vector<1x225xf32>
    %c0_1 = arith.constant 0 : index
    %c0_2 = arith.constant 0 : index
    %1 = vector.load %arg1[%c0_1, %c0_2] : memref<30x1xf32, #tpu.memory_space<vmem>>, vector<30x1xf32>
    %c0_3 = arith.constant 0 : index
    %c0_4 = arith.constant 0 : index
    %2 = vector.load %arg2[%c0_3, %c0_4] : memref<30x1xf32, #tpu.memory_space<vmem>>, vector<30x1xf32>
    %3 = vector.broadcast %0 : vector<1x225xf32> to vector<30x225xf32>
    %4 = vector.broadcast %1 : vector<30x1xf32> to vector<30x225xf32>
    %5 = arith.mulf %3, %4 : vector<30x225xf32>
    %6 = vector.broadcast %2 : vector<30x1xf32> to vector<30x225xf32>
    %7 = arith.addf %5, %6 : vector<30x225xf32>
    %cst = arith.constant 0.833561956 : f32
    %8 = vector.broadcast %cst : f32 to vector<30x225xf32>
    %9 = arith.mulf %7, %8 : vector<30x225xf32>
    %10 = math.tanh %9 : vector<30x225xf32>
    %cst_5 = arith.constant 1.000000e+00 : f32
    %11 = vector.broadcast %cst_5 : f32 to vector<30x225xf32>
    %12 = arith.addf %10, %11 : vector<30x225xf32>
    %c0_6 = arith.constant 0 : index
    %c0_7 = arith.constant 0 : index
    %13 = vector.load %arg3[%c0_6, %c0_7] : memref<30x225xf32, #tpu.memory_space<vmem>>, vector<30x225xf32>
    tpu.vector_store %arg3[%c0_6, %c0_7], %12 {strides = array<i32>} : memref<30x225xf32, #tpu.memory_space<vmem>>, vector<30x225xf32>,
    return
  }
}

</mosaic_0001>

<bundles_post_ra>
// kernel: model_forward.1
= control target key start
LH: loop header
LB: loop body
LE: loop exit
PB: predicated region body
PF: predicated region fallthrough
CT: control target
= control target key end

     0   :  { %v147_v0 = vmov 0   ;;  %v24_v9 = vlaneseq  ;;  %vm115_vm0 = vcmask 793600   ;;  %vm122_vm1 = vcmask 791552   ;;  %s222_s1 = inlined_call_operand.vmem [shape: f32[30,1], index: 1, kind: input, shape index: {}]   ;;  %s223_s2 = inlined_call_operand.vmem [shape: f32[30,1], index: 2, kind: input, shape index: {}]   ;;  %s224_s0 = inlined_call_operand.vmem [shape: f32[1,225], index: 0, kind: input, shape index: {}]   ;;  %s225_s3 = inlined_call_operand.vmem [shape: f32[30,225], index: 3, kind: output, shape index: {}]  }
   0x1   :  { %130 = vset.pattern.permute.xlu1 %v147_v0  ;;  %129 = vset.pattern.permute.xlu0 %v147_v0  ;;  %v17_v1 = vld [vmem:[%s222_s1 + $0x10] sm:$0xff]  ;;  %v15_v2 = vld [vmem:[%s222_s1] sm:$0xff]  ;;  %v18_v3 = vld [vmem:[%s222_s1 + $0x18] sm:$0x3f] }
   0x2   :  { %46 = vperm.xlu1 %130, %v17_v1   ;;  %36 = vperm.xlu0 %129, %v15_v2   ;;  %v16_v4 = vld [vmem:[%s222_s1 + $0x8] sm:$0xff]  ;;  %v19_v6 = vld [vmem:[%s223_s2] sm:$0xff]  ;;  %v22_v7 = vld [vmem:[%s223_s2 + $0x18] sm:$0x3f]  ;;  %v25_v10 = vshrl.u32 %v24_v9, 7 }
   0x3   :  { %v20_v5 = vld [vmem:[%s223_s2 + $0x8] sm:$0xff]  ;;  %v21_v8 = vld [vmem:[%s223_s2 + $0x10] sm:$0xff]  ;;  %v14_v14 = vld [vmem:[%s224_s0] sm:$0x3] }
   0x4   :  { %v26_v11 = vsub.s32 0, %v25_v10  ;;  %v30_v12 = vsub.s32 1, %v25_v10 }
   0x6   :  { %51 = vperm.xlu1 %130, %v18_v3   ;;  %41 = vperm.xlu0 %129, %v16_v4   ;;  %v27_v16 = vrot.slane %v14_v14, %v26_v11  ;;  %v31_v17 = vrot.slane %v14_v14, %v30_v12 }
   0xa   :  { %69 = vperm.xlu1 %130, %v20_v5   ;;  %64 = vperm.xlu0 %129, %v19_v6  }
   0xe   :  { %79 = vperm.xlu1 %130, %v22_v7   ;;  %74 = vperm.xlu0 %129, %v21_v8  }
  0x81   :  { %v47_v13 = vpop.permute.xlu1 %46  ;;  %v37_v15 = vpop.permute.xlu0 %36 }
  0x82   :  { %v54_v20 = vmul.f32 %v37_v15, %v27_v16  ;;  %v55_v21 = vmul.f32 %v37_v15, %v31_v17  ;;  %v58_v30 = vmul.f32 %v47_v13, %v27_v16  ;;  %v59_v36 = vmul.f32 %v47_v13, %v31_v17 }
  0x85   :  { %v52_v18 = vpop.permute.xlu1 %51  ;;  %v42_v19 = vpop.permute.xlu0 %41 }
  0x86   :  { %v56_v22 = vmul.f32 %v42_v19, %v27_v16  ;;  %v57_v23 = vmul.f32 %v42_v19, %v31_v17  ;;  %v60_v31 = vmul.f32 %v52_v18, %v27_v16  ;;  %v61_v32 = vmul.f32 %v52_v18, %v31_v17 }
  0x89   :  { %v70_v24 = vpop.permute.xlu1 %69  ;;  %v65_v25 = vpop.permute.xlu0 %64 }
  0x8a   :  { %v84_v26 = vadd.f32 %v70_v24, %v56_v22  ;;  %v85_v27 = vadd.f32 %v70_v24, %v57_v23  ;;  %v82_v28 = vadd.f32 %v65_v25, %v54_v20  ;;  %v83_v29 = vadd.f32 %v65_v25, %v55_v21 }
  0x8c   :  { %v92_v33 = vmul.f32 0.83356196, %v84_v26  ;;  %v93_v34 = vmul.f32 0.83356196, %v85_v27  ;;  %v90_v35 = vmul.f32 0.83356196, %v82_v28 }
  0x8d   :  { %v91_v37 = vmul.f32 0.83356196, %v83_v29  ;;  %v80_v38 = vpop.permute.xlu1 %79  ;;  %v75_v39 = vpop.permute.xlu0 %74 }
  0x8e   :  { %131 = vtanh.f32 %v92_v33  ;;  %v88_v40 = vadd.f32 %v80_v38, %v60_v31  ;;  %v89_v41 = vadd.f32 %v80_v38, %v61_v32  ;;  %v86_v42 = vadd.f32 %v75_v39, %v58_v30 }
  0x8f   :  { %133 = vtanh.f32 %v93_v34  ;;  %v87_v43 = vadd.f32 %v75_v39, %v59_v36 }
  0x90   :  { %135 = vtanh.f32 %v90_v35  ;;  %v96_v44 = vmul.f32 0.83356196, %v88_v40  ;;  %v97_v45 = vmul.f32 0.83356196, %v89_v41  ;;  %v94_v46 = vmul.f32 0.83356196, %v86_v42 }
  0x91   :  { %137 = vtanh.f32 %v91_v37  ;;  %v95_v47 = vmul.f32 0.83356196, %v87_v43 }
  0x92   :  { %139 = vtanh.f32 %v96_v44 }
  0x93   :  { %141 = vtanh.f32 %v97_v45 }
  0x94   :  { %143 = vtanh.f32 %v94_v46 }
  0x95   :  { %145 = vtanh.f32 %v95_v47 }
  0x98   :  { %v132_v48 = vpop.eup %131 }
  0x99   :  { %v134_v49 = vpop.eup %133  ;;  %v108_v50 = vadd.f32 1.0, %v132_v48 }
  0x9a   :  { %v136_v51 = vpop.eup %135  ;;  %v109_v52 = vadd.f32 1.0, %v134_v49 }
  0x9b   :  { %v138_v53 = vpop.eup %137  ;;  %117 = vst [vmem:[%s225_s3 + $0x10] sm:$0xff] %v108_v50  ;;  %v106_v54 = vadd.f32 1.0, %v136_v51 }
  0x9c   :  { %v140_v55 = vpop.eup %139  ;;  %118 = vst.msk [vmem:[%s225_s3 + $0x18] sm:$0xff] %vm115_vm0, %v109_v52  ;;  %v107_v56 = vadd.f32 1.0, %v138_v53 }
  0x9d   :  { %v142_v57 = vpop.eup %141  ;;  %114 = vst [vmem:[%s225_s3] sm:$0xff] %v106_v54  ;;  %v112_v58 = vadd.f32 1.0, %v140_v55 }
  0x9e   :  { %v144_v59 = vpop.eup %143  ;;  %116 = vst.msk [vmem:[%s225_s3 + $0x8] sm:$0xff] %vm115_vm0, %v107_v56  ;;  %v113_v60 = vadd.f32 1.0, %v142_v57 }
  0x9f   :  { %v146_v61 = vpop.eup %145  ;;  %121 = vst [vmem:[%s225_s3 + $0x30] sm:$0x3f] %v112_v58  ;;  %v110_v62 = vadd.f32 1.0, %v144_v59 }
  0xa0   :  { %123 = vst.msk [vmem:[%s225_s3 + $0x38] sm:$0x3f] %vm122_vm1, %v113_v60  ;;  %v111_v63 = vadd.f32 1.0, %v146_v61 }
  0xa1   :  { %119 = vst [vmem:[%s225_s3 + $0x20] sm:$0xff] %v110_v62 }
  0xa2   :  { %120 = vst.msk [vmem:[%s225_s3 + $0x28] sm:$0xff] %vm115_vm0, %v111_v63 }

</bundles_post_ra>
